<compile_context>
chip_gen: v5e
topology: v5e:2x2
jax: 0.10.0
libtpu: 0.0.40
codegen_flags: <defaults>
</compile_context>

<pallas_src>
import functools

import jax
import jax.numpy as jnp
from jax.experimental import pallas as pl
from jax.experimental.pallas import tpu as pltpu

# The reference module uses an undefined global `generator_output_size`;
# pick a small deterministic value consistent with the MLP structure.
GENERATOR_OUTPUT_SIZE = 128
HIDDEN = (256, 128, 64, 1)


def _round_up(n, m):
    return ((n + m - 1) // m) * m


def _device_kind():
    try:
        return jax.devices()[0].device_kind.lower()
    except Exception:
        return ""


def _default_batch_tile(kind):
    # v5e scoped-VMEM default is 16 MiB -> cap at 2048; v6e/v7x default 32 MiB -> 4096.
    return 2048 if "v5" in kind else 4096


def _default_bf16_epilogue(kind):
    # v5e VPU/EUP have no native bf16; keep the bias-add/LeakyReLU epilogue in f32 there.
    return "v5" not in kind


def _leaky_relu(x, slope=0.2):
    # max-form: mul+max (2 VALU ops/vreg) instead of where's cmp+mul+select (3).
    return jnp.maximum(x, slope * x)


def discriminator_kernel(x_ref,
                         w1_ref, b1_ref,
                         w2_ref, b2_ref,
                         w3_ref, b3_ref,
                         w4_ref, b4_ref,
                         o_ref,
                         *, bf16_epilogue):
    ep = jnp.bfloat16 if bf16_epilogue else jnp.float32

    # Layer 1: Linear(D_in -> 256) + LeakyReLU(0.2)  (bf16 MXU operands, f32 acc)
    x = x_ref[...].astype(jnp.bfloat16)          # no-op if x is already bf16
    h = jnp.dot(x, w1_ref[...], preferred_element_type=jnp.float32)
    h = _leaky_relu(h.astype(ep) + b1_ref[...])
    # Layer 2: Linear(256 -> 128) + LeakyReLU(0.2)
    h = jnp.dot(h.astype(jnp.bfloat16), w2_ref[...],
                preferred_element_type=jnp.float32)
    h = _leaky_relu(h.astype(ep) + b2_ref[...])
    # Layer 3: Linear(128 -> 64) + LeakyReLU(0.2)
    h = jnp.dot(h.astype(jnp.bfloat16), w3_ref[...],
                preferred_element_type=jnp.float32)
    h = _leaky_relu(h.astype(ep) + b3_ref[...])
    # Layer 4: Linear(64 -> 1) as VPU multiply + lane reduction, in f32.
    z = jnp.sum(h.astype(jnp.float32) * w4_ref[...], axis=-1, keepdims=True)
    z = z + b4_ref[...]
    # Lane-dense epilogue: (tile, 1) -> (1, tile) on the XLU, then one tanh EUP
    # push per packed vreg and unmasked lane-dense stores.
    z_row = jnp.transpose(z, (1, 0))
    o_ref[...] = (0.5 * (jnp.tanh(0.5 * z_row) + 1.0)).astype(o_ref.dtype)


def discriminator_forward(x, params, *, batch_tile=None, bf16_epilogue=None):
    """x: [B, D_in] float32 or bfloat16. params: list of (W [in,out], b [1,out]) f32.

    Returns sigmoid outputs of shape [B, 1] (float32).
    """
    B, D_in = x.shape
    kind = _device_kind()
    if batch_tile is None:
        batch_tile = _default_batch_tile(kind)
    if bf16_epilogue is None:
        bf16_epilogue = _default_bf16_epilogue(kind)
    ep = jnp.bfloat16 if bf16_epilogue else jnp.float32

    (w1, b1), (w2, b2), (w3, b3), (w4, b4) = params
    # bf16 operands for the MXU layers; biases in the epilogue dtype.
    w1b = w1.astype(jnp.bfloat16)
    w2b = w2.astype(jnp.bfloat16)
    w3b = w3.astype(jnp.bfloat16)
    b1e = b1.reshape(1, -1).astype(ep)
    b2e = b2.reshape(1, -1).astype(ep)
    b3e = b3.reshape(1, -1).astype(ep)
    w4_row = w4.reshape(1, -1).astype(jnp.float32)   # (1, 64)
    b4_s = b4.reshape(1, 1).astype(jnp.float32)

    # Give the parallel grid axis >= 2 steps for larger batches so both v7x
    # TensorCores get work (harmless elsewhere; per-step overhead ~0.35 us).
    if B >= 256:
        batch_tile = min(int(batch_tile), max(128, _round_up((B + 1) // 2, 128)))
    batch_tile = max(8, min(int(batch_tile), _round_up(B, 8)))
    batch_tile = _round_up(batch_tile, 8)

    num_tiles = pl.cdiv(B, batch_tile)
    b_pad = num_tiles * batch_tile
    if b_pad != B:
        # Padded rows compute harmless garbage that is sliced off below.
        x = jnp.pad(x, ((0, b_pad - B), (0, 0)))

    def full_spec(arr):
        # Small resident tensors: same block every grid step (no re-DMA).
        return pl.BlockSpec(arr.shape, lambda i, _nd=arr.ndim: (0,) * _nd)

    kernel = functools.partial(discriminator_kernel, bf16_epilogue=bf16_epilogue)

    out = pl.pallas_call(
        kernel,
        out_shape=jax.ShapeDtypeStruct((num_tiles, 1, batch_tile), jnp.float32),
        grid_spec=pl.GridSpec(
            grid=(num_tiles,),
            in_specs=[
                pl.BlockSpec((batch_tile, D_in), lambda i: (i, 0)),
                full_spec(w1b), full_spec(b1e),
                full_spec(w2b), full_spec(b2e),
                full_spec(w3b), full_spec(b3e),
                full_spec(w4_row), full_spec(b4_s),
            ],
            # Squeezed leading tile index; kernel sees a lane-dense (1, batch_tile) block.
            out_specs=pl.BlockSpec((None, 1, batch_tile), lambda i: (i, 0, 0)),
        ),
        compiler_params=pltpu.CompilerParams(
            dimension_semantics=("parallel",)),
    )(x, w1b, b1e, w2b, b2e, w3b, b3e, w4_row, b4_s)

    return out.reshape(b_pad, 1)[:B]


def init_params(key, d_in=GENERATOR_OUTPUT_SIZE, hidden=HIDDEN):
    """PyTorch-Linear-style init U(-1/sqrt(fan_in), 1/sqrt(fan_in)); W stored [in,out]."""
    params = []
    dims = (d_in,) + tuple(hidden)
    for li in range(len(hidden)):
        fan_in, fan_out = dims[li], dims[li + 1]
        key, kw, kb = jax.random.split(key, 3)
        bound = 1.0 / jnp.sqrt(fan_in)
        w = jax.random.uniform(kw, (fan_in, fan_out), jnp.float32, -bound, bound)
        b = jax.random.uniform(kb, (1, fan_out), jnp.float32, -bound, bound)
        params.append((w, b))
    return params


def reference_forward(x, params, *, bf16_epilogue=True):
    """Pure-JAX reference mirroring the kernel's bf16-operand / f32-acc recipe."""
    ep = jnp.bfloat16 if bf16_epilogue else jnp.float32
    h = x
    for w, b in params[:-1]:
        h = jnp.dot(h.astype(jnp.bfloat16), w.astype(jnp.bfloat16),
                    preferred_element_type=jnp.float32)
        h = h.astype(ep) + b.reshape(1, -1).astype(ep)
        h = jnp.maximum(h, 0.2 * h)
    w, b = params[-1]
    z = jnp.dot(h.astype(jnp.float32), w.astype(jnp.float32)) + b.reshape(1, -1)
    return jax.nn.sigmoid(z)


if __name__ == "__main__":
    key = jax.random.PRNGKey(0)
    k_params, k_x1, k_x2, k_x3 = jax.random.split(key, 4)
    params = init_params(k_params)

    bf16_ep = _default_bf16_epilogue(_device_kind())

    # Small batch (single tile).
    B1 = 8
    x_small = jax.random.normal(k_x1, (B1, GENERATOR_OUTPUT_SIZE), jnp.float32)
    out_small = jax.block_until_ready(discriminator_forward(x_small, params))
    ref_small = reference_forward(x_small, params, bf16_epilogue=bf16_ep)
    assert out_small.shape == (B1, 1), out_small.shape
    assert jnp.allclose(out_small, ref_small, atol=5e-3, rtol=5e-3), \
        "small-batch mismatch vs JAX reference"

    # Ragged multi-tile batch: exercises cdiv grid, pipelined x tiles, padding
    # of the last tile and the lane-dense (num_tiles, 1, tile) output layout.
    B2 = 200
    x_big = jax.random.normal(k_x2, (B2, GENERATOR_OUTPUT_SIZE), jnp.float32)
    out_big = jax.block_until_ready(
        discriminator_forward(x_big, params, batch_tile=64))
    ref_big = reference_forward(x_big, params, bf16_epilogue=bf16_ep)
    assert out_big.shape == (B2, 1), out_big.shape
    assert jnp.allclose(out_big, ref_big, atol=5e-3, rtol=5e-3), \
        "multi-tile mismatch vs JAX reference"

    # bf16 input at the API boundary (producer-emitted bf16; no wrapper-side cast).
    B3 = 64
    x_bf16 = jax.random.normal(
        k_x3, (B3, GENERATOR_OUTPUT_SIZE), jnp.float32).astype(jnp.bfloat16)
    out_bf = jax.block_until_ready(discriminator_forward(x_bf16, params))
    ref_bf = reference_forward(x_bf16, params, bf16_epilogue=bf16_ep)
    assert out_bf.shape == (B3, 1), out_bf.shape
    assert jnp.allclose(out_bf, ref_bf, atol=5e-3, rtol=5e-3), \
        "bf16-input mismatch vs JAX reference"

    print("KERNEL_OK")
</pallas_src>

<mosaic_0001>
module attributes {stable_mosaic.version = 11 : i64} {
  func.func @discriminator_kernel(%arg0: i32, %arg1: memref<8x128xf32, #tpu.memory_space<vmem>>, %arg2: memref<128x256xbf16, #tpu.memory_space<vmem>>, %arg3: memref<1x256xbf16, #tpu.memory_space<vmem>>, %arg4: memref<256x128xbf16, #tpu.memory_space<vmem>>, %arg5: memref<1x128xbf16, #tpu.memory_space<vmem>>, %arg6: memref<128x64xbf16, #tpu.memory_space<vmem>>, %arg7: memref<1x64xbf16, #tpu.memory_space<vmem>>, %arg8: memref<1x64xf32, #tpu.memory_space<vmem>>, %arg9: memref<1x1xf32, #tpu.memory_space<vmem>>, %arg10: memref<1x1x8xf32, #tpu.memory_space<vmem>>) attributes {dimension_semantics = [#tpu.dimension_semantics<parallel>], iteration_bounds = array<i64: 1>, scalar_prefetch = 0 : i64, scratch_operands = 0 : i64, tpu.core_type = #tpu.core_type<tc>, window_params = [{transform_indices = @transform_0, window_bounds = array<i64: 8, 128>}, {pipeline_mode = #tpu.pipeline_mode<synchronous>, transform_indices = @transform_1, window_bounds = array<i64: 128, 256>}, {pipeline_mode = #tpu.pipeline_mode<synchronous>, transform_indices = @transform_2, window_bounds = array<i64: 1, 256>}, {pipeline_mode = #tpu.pipeline_mode<synchronous>, transform_indices = @transform_3, window_bounds = array<i64: 256, 128>}, {pipeline_mode = #tpu.pipeline_mode<synchronous>, transform_indices = @transform_4, window_bounds = array<i64: 1, 128>}, {pipeline_mode = #tpu.pipeline_mode<synchronous>, transform_indices = @transform_5, window_bounds = array<i64: 128, 64>}, {pipeline_mode = #tpu.pipeline_mode<synchronous>, transform_indices = @transform_6, window_bounds = array<i64: 1, 64>}, {pipeline_mode = #tpu.pipeline_mode<synchronous>, transform_indices = @transform_7, window_bounds = array<i64: 1, 64>}, {pipeline_mode = #tpu.pipeline_mode<synchronous>, transform_indices = @transform_8, window_bounds = array<i64: 1, 1>}, {transform_indices = @transform_9, window_bounds = array<i64: 1, 1, 8>}]} {
    %c0 = arith.constant 0 : index
    %c0_0 = arith.constant 0 : index
    %0 = vector.load %arg1[%c0, %c0_0] : memref<8x128xf32, #tpu.memory_space<vmem>>, vector<8x128xf32>
    %1 = arith.truncf %0 : vector<8x128xf32> to vector<8x128xbf16>
    %c0_1 = arith.constant 0 : index
    %c0_2 = arith.constant 0 : index
    %2 = vector.load %arg2[%c0_1, %c0_2] : memref<128x256xbf16, #tpu.memory_space<vmem>>, vector<128x256xbf16>
    %cst = arith.constant dense<0.000000e+00> : vector<8x256xf32>
    %3 = tpu.matmul %1, %2, %cst {dimension_numbers = #tpu.dot_dimension_numbers<[1], [0], [0], [1], [0, 0, 1, 1], [], []>} : vector<8x128xbf16>, vector<128x256xbf16>, vector<8x256xf32> -> vector<8x256xf32>
    %4 = arith.truncf %3 : vector<8x256xf32> to vector<8x256xbf16>
    %c0_3 = arith.constant 0 : index
    %c0_4 = arith.constant 0 : index
    %5 = vector.load %arg3[%c0_3, %c0_4] : memref<1x256xbf16, #tpu.memory_space<vmem>>, vector<1x256xbf16>
    %6 = vector.broadcast %5 : vector<1x256xbf16> to vector<8x256xbf16>
    %7 = arith.addf %4, %6 : vector<8x256xbf16>
    %cst_5 = arith.constant 2.001950e-01 : bf16
    %8 = vector.broadcast %cst_5 : bf16 to vector<8x256xbf16>
    %9 = arith.mulf %8, %7 : vector<8x256xbf16>
    %10 = arith.maximumf %7, %9 : vector<8x256xbf16>
    %c0_6 = arith.constant 0 : index
    %c0_7 = arith.constant 0 : index
    %11 = vector.load %arg4[%c0_6, %c0_7] : memref<256x128xbf16, #tpu.memory_space<vmem>>, vector<256x128xbf16>
    %cst_8 = arith.constant dense<0.000000e+00> : vector<8x128xf32>
    %12 = tpu.matmul %10, %11, %cst_8 {dimension_numbers = #tpu.dot_dimension_numbers<[1], [0], [0], [1], [0, 0, 1, 1], [], []>} : vector<8x256xbf16>, vector<256x128xbf16>, vector<8x128xf32> -> vector<8x128xf32>
    %13 = arith.truncf %12 : vector<8x128xf32> to vector<8x128xbf16>
    %c0_9 = arith.constant 0 : index
    %c0_10 = arith.constant 0 : index
    %14 = vector.load %arg5[%c0_9, %c0_10] : memref<1x128xbf16, #tpu.memory_space<vmem>>, vector<1x128xbf16>
    %15 = vector.broadcast %14 : vector<1x128xbf16> to vector<8x128xbf16>
    %16 = arith.addf %13, %15 : vector<8x128xbf16>
    %cst_11 = arith.constant 2.001950e-01 : bf16
    %17 = vector.broadcast %cst_11 : bf16 to vector<8x128xbf16>
    %18 = arith.mulf %17, %16 : vector<8x128xbf16>
    %19 = arith.maximumf %16, %18 : vector<8x128xbf16>
    %c0_12 = arith.constant 0 : index
    %c0_13 = arith.constant 0 : index
    %20 = vector.load %arg6[%c0_12, %c0_13] : memref<128x64xbf16, #tpu.memory_space<vmem>>, vector<128x64xbf16>
    %cst_14 = arith.constant dense<0.000000e+00> : vector<8x64xf32>
    %21 = tpu.matmul %19, %20, %cst_14 {dimension_numbers = #tpu.dot_dimension_numbers<[1], [0], [0], [1], [0, 0, 1, 1], [], []>} : vector<8x128xbf16>, vector<128x64xbf16>, vector<8x64xf32> -> vector<8x64xf32>
    %22 = arith.truncf %21 : vector<8x64xf32> to vector<8x64xbf16>
    %c0_15 = arith.constant 0 : index
    %c0_16 = arith.constant 0 : index
    %23 = vector.load %arg7[%c0_15, %c0_16] : memref<1x64xbf16, #tpu.memory_space<vmem>>, vector<1x64xbf16>
    %24 = vector.broadcast %23 : vector<1x64xbf16> to vector<8x64xbf16>
    %25 = arith.addf %22, %24 : vector<8x64xbf16>
    %cst_17 = arith.constant 2.001950e-01 : bf16
    %26 = vector.broadcast %cst_17 : bf16 to vector<8x64xbf16>
    %27 = arith.mulf %26, %25 : vector<8x64xbf16>
    %28 = arith.maximumf %25, %27 : vector<8x64xbf16>
    %29 = arith.extf %28 : vector<8x64xbf16> to vector<8x64xf32>
    %c0_18 = arith.constant 0 : index
    %c0_19 = arith.constant 0 : index
    %30 = vector.load %arg8[%c0_18, %c0_19] : memref<1x64xf32, #tpu.memory_space<vmem>>, vector<1x64xf32>
    %31 = vector.broadcast %30 : vector<1x64xf32> to vector<8x64xf32>
    %32 = arith.mulf %29, %31 : vector<8x64xf32>
    %cst_20 = arith.constant dense<0.000000e+00> : vector<8xf32>
    %33 = vector.multi_reduction <add>, %32, %cst_20 [1] : vector<8x64xf32> to vector<8xf32>
    %34 = vector.shape_cast %33 : vector<8xf32> to vector<8x1xf32>
    %c0_21 = arith.constant 0 : index
    %c0_22 = arith.constant 0 : index
    %35 = vector.load %arg9[%c0_21, %c0_22] : memref<1x1xf32, #tpu.memory_space<vmem>>, vector<1x1xf32>
    %36 = vector.broadcast %35 : vector<1x1xf32> to vector<8x1xf32>
    %37 = arith.addf %34, %36 : vector<8x1xf32>
    %38 = tpu.transpose %37, [1, 0] : vector<8x1xf32> -> vector<1x8xf32>
    %cst_23 = arith.constant 5.000000e-01 : f32
    %39 = vector.broadcast %cst_23 : f32 to vector<1x8xf32>
    %40 = arith.mulf %39, %38 : vector<1x8xf32>
    %41 = math.tanh %40 : vector<1x8xf32>
    %cst_24 = arith.constant 1.000000e+00 : f32
    %42 = vector.broadcast %cst_24 : f32 to vector<1x8xf32>
    %43 = arith.addf %41, %42 : vector<1x8xf32>
    %cst_25 = arith.constant 5.000000e-01 : f32
    %44 = vector.broadcast %cst_25 : f32 to vector<1x8xf32>
    %45 = arith.mulf %44, %43 : vector<1x8xf32>
    %c0_26 = arith.constant 0 : index
    %c0_27 = arith.constant 0 : index
    %c0_28 = arith.constant 0 : index
    %46 = vector.load %arg10[%c0_26, %c0_27, %c0_28] : memref<1x1x8xf32, #tpu.memory_space<vmem>>, vector<1x1x8xf32>
    %47 = vector.shape_cast %46 : vector<1x1x8xf32> to vector<1x8xf32>
    %48 = vector.shape_cast %45 : vector<1x8xf32> to vector<1x1x8xf32>
    tpu.vector_store %arg10[%c0_26, %c0_27, %c0_28], %48 {strides = array<i32>} : memref<1x1x8xf32, #tpu.memory_space<vmem>>, vector<1x1x8xf32>,
    return
  }
  func.func @transform_0(%arg0: i32) -> (i32, i32) {
    %c0_i32 = arith.constant 0 : i32
    %c0_i32_0 = arith.constant 0 : i32
    return %arg0, %c0_i32 : i32, i32
  }
  func.func @transform_1(%arg0: i32) -> (i32, i32) {
    %c0_i32 = arith.constant 0 : i32
    %c0_i32_0 = arith.constant 0 : i32
    %c0_i32_1 = arith.constant 0 : i32
    return %c0_i32, %c0_i32_0 : i32, i32
  }
  func.func @transform_2(%arg0: i32) -> (i32, i32) {
    %c0_i32 = arith.constant 0 : i32
    %c0_i32_0 = arith.constant 0 : i32
    %c0_i32_1 = arith.constant 0 : i32
    return %c0_i32, %c0_i32_0 : i32, i32
  }
  func.func @transform_3(%arg0: i32) -> (i32, i32) {
    %c0_i32 = arith.constant 0 : i32
    %c0_i32_0 = arith.constant 0 : i32
    %c0_i32_1 = arith.constant 0 : i32
    return %c0_i32, %c0_i32_0 : i32, i32
  }
  func.func @transform_4(%arg0: i32) -> (i32, i32) {
    %c0_i32 = arith.constant 0 : i32
    %c0_i32_0 = arith.constant 0 : i32
    %c0_i32_1 = arith.constant 0 : i32
    return %c0_i32, %c0_i32_0 : i32, i32
  }
  func.func @transform_5(%arg0: i32) -> (i32, i32) {
    %c0_i32 = arith.constant 0 : i32
    %c0_i32_0 = arith.constant 0 : i32
    %c0_i32_1 = arith.constant 0 : i32
    return %c0_i32, %c0_i32_0 : i32, i32
  }
  func.func @transform_6(%arg0: i32) -> (i32, i32) {
    %c0_i32 = arith.constant 0 : i32
    %c0_i32_0 = arith.constant 0 : i32
    %c0_i32_1 = arith.constant 0 : i32
    return %c0_i32, %c0_i32_0 : i32, i32
  }
  func.func @transform_7(%arg0: i32) -> (i32, i32) {
    %c0_i32 = arith.constant 0 : i32
    %c0_i32_0 = arith.constant 0 : i32
    %c0_i32_1 = arith.constant 0 : i32
    return %c0_i32, %c0_i32_0 : i32, i32
  }
  func.func @transform_8(%arg0: i32) -> (i32, i32) {
    %c0_i32 = arith.constant 0 : i32
    %c0_i32_0 = arith.constant 0 : i32
    %c0_i32_1 = arith.constant 0 : i32
    return %c0_i32, %c0_i32_0 : i32, i32
  }
  func.func @transform_9(%arg0: i32) -> (i32, i32, i32) {
    %c0_i32 = arith.constant 0 : i32
    %c0_i32_0 = arith.constant 0 : i32
    %c0_i32_1 = arith.constant 0 : i32
    return %arg0, %c0_i32, %c0_i32_0 : i32, i32, i32
  }
}

</mosaic_0001>

<bundles_post_ra>
// kernel: tpu_custom_call.1
= control target key start
LH: loop header
LB: loop body
LE: loop exit
PB: predicated region body
PF: predicated region fallthrough
CT: control target
= control target key end

     0   :  { %s953_s0 = inlined_call_operand.vmem [shape: f32[8,128], index: 0, kind: input, shape index: {}]   ;;  %s954_s1 = inlined_call_operand.hbm [shape: bf16[128,256], index: 1, kind: input, shape index: {}]   ;;  %s955_s2 = inlined_call_operand.vmem [shape: bf16[1,256], index: 2, kind: input, shape index: {}]   ;;  %s956_s3 = inlined_call_operand.hbm [shape: bf16[256,128], index: 3, kind: input, shape index: {}]   ;;  %s957_s4 = inlined_call_operand.vmem [shape: bf16[1,128], index: 4, kind: input, shape index: {}]   ;;  %s958_s5 = inlined_call_operand.vmem [shape: bf16[128,64], index: 5, kind: input, shape index: {}]   ;;  %s959_s6 = inlined_call_operand.vmem [shape: bf16[1,64], index: 6, kind: input, shape index: {}]   ;;  %s960_s7 = inlined_call_operand.vmem [shape: f32[1,64], index: 7, kind: input, shape index: {}]   ;;  %s961_s8 = inlined_call_operand.<no memory space> [shape: f32[1,1], index: 8, kind: input, shape index: {}]   ;;  %s962_s9 = inlined_call_operand.hbm [shape: f32[1,1,8], index: 9, kind: output, shape index: {}]  }
   0x1   :  { %v14_v0 = vstv %s961_s8 }
   0x2   :  { %15 = vst [vmem:[#allocation2] sm:$0x1] %v14_v0 }
   0x3   :  { %16 = vsyncpa [#allocation4], 0 }
   0x4   :  { %17 = vsyncpa [#allocation7], 0 }
   0x5   :  { %18 = vsyncpa [#allocation5], 0  ;;  %s25_s13 = sshll.u32 %s954_s1, 4  ;;  %s845_s14 = smov [#allocation3]   ;;  %s26_s13 = int_to_ptr.hbm [resolvable:$true] %s25_s13 }
   0x6   :  { %s27_s15 = sshll.u32 %s845_s14, 4  ;;  %s40_s18 = sshll.u32 %s956_s3, 4  ;;  %s28_s15 = int_to_ptr.vmem [resolvable:$true] %s27_s15  ;;  %s41_s18 = int_to_ptr.hbm [resolvable:$true] %s40_s18 }
   0x7   :  { %s846_s19 = smov 128   ;;  %s847_s20 = smov 8  }
   0x8   :  { %33 = dma.hbm_to_vmem [thread:$0]  %s26_s13, 2048, %s28_s15, [#allocation4], %s846_s19, %s846_s19, %s847_s20  }
   0x9   :  { %s848_s8 = smov [#allocation6]   ;;  %s849_s22 = smov 64  }
   0xa   :  { %s42_s21 = sshll.u32 %s848_s8, 4  ;;  %s850_s23 = smov 4   ;;  %s43_s21 = int_to_ptr.vmem [resolvable:$true] %s42_s21 }
   0xb   :  { %48 = dma.hbm_to_vmem [thread:$0]  %s41_s18, 2048, %s43_s21, [#allocation7], %s849_s22, %s849_s22, %s850_s23  }
   0xc   :  { %839 = dma.done.wait [#allocation4], 2048  }
   0xd   :  { %840 = vsyncadd [#allocation4], 4294965248 }
   0xe   :  { %841 = dma.done.wait [#allocation7], 2048  }
   0xf   :  { %842 = vsyncadd [#allocation7], 4294965248  ;;  %v613_v1 = vld [vmem:[#allocation3 + $0x70] sm:$0xf]  ;;  %v730_v2 = vld [vmem:[#allocation3 + $0x74] sm:$0xf0] }
  0x10   :  { %v729_v3 = vld [vmem:[#allocation3 + $0x74] sm:$0xf]  ;;  %v614_v4 = vor.u32 %v730_v2, %v613_v1  ;;  %v615_v5 = vld [vmem:[#allocation3 + $0x78] sm:$0xf0]  ;;  %v605_v6 = vld [vmem:[#allocation3 + $0x60] sm:$0xf] }
  0x11   :  { %v728_v7 = vld [vmem:[#allocation3 + $0x64] sm:$0xf0]  ;;  %v618_v8 = vor.u32 %v729_v3, %v615_v5  ;;  %v727_v9 = vld [vmem:[#allocation3 + $0x64] sm:$0xf]  ;;  %v607_v10 = vld [vmem:[#allocation3 + $0x68] sm:$0xf0] }
  0x12   :  { %165 = vmatpush.bf16.msra.mxu0 %v614_v4  ;;  %v606_v11 = vor.u32 %v728_v7, %v605_v6  ;;  %v610_v12 = vor.u32 %v727_v9, %v607_v10  ;;  %v597_v13 = vld [vmem:[#allocation3 + $0x50] sm:$0xf]  ;;  %v726_v14 = vld [vmem:[#allocation3 + $0x54] sm:$0xf0]  ;;  %v725_v15 = vld [vmem:[#allocation3 + $0x54] sm:$0xf] }
  0x13   :  { %178 = vmatpush.bf16.msra.mxu1 %v618_v8  ;;  %v599_v16 = vld [vmem:[#allocation3 + $0x58] sm:$0xf0]  ;;  %v598_v17 = vor.u32 %v726_v14, %v597_v13  ;;  %v589_v19 = vld [vmem:[#allocation3 + $0x40] sm:$0xf]  ;;  %v724_v20 = vld [vmem:[#allocation3 + $0x44] sm:$0xf0] }
  0x14   :  { %v602_v18 = vor.u32 %v725_v15, %v599_v16  ;;  %v723_v21 = vld [vmem:[#allocation3 + $0x44] sm:$0xf]  ;;  %v591_v22 = vld [vmem:[#allocation3 + $0x48] sm:$0xf0]  ;;  %v590_v23 = vor.u32 %v724_v20, %v589_v19  ;;  %v581_v24 = vld [vmem:[#allocation3 + $0x30] sm:$0xf] }
  0x15   :  { %v738_v25 = vld [vmem:[#allocation6 + $0x38] sm:$0xff]  ;;  %v594_v27 = vor.u32 %v723_v21, %v591_v22  ;;  %v721_v29 = vld [vmem:[#allocation3 + $0x34] sm:$0xf]  ;;  %v573_v35 = vld [vmem:[#allocation3 + $0x20] sm:$0xf]  ;;  %vm490_vm0 = vcmask 523264  }
  0x16   :  { %166 = vmatpush.bf16.msra.mxu0 %v606_v11  ;;  %v746_v26 = vld [vmem:[#allocation6 + $0x78] sm:$0xff]  ;;  %349 = vmatpush.bf16.msra.mxu2 %v738_v25  ;;  %v737_v31 = vld [vmem:[#allocation6 + $0x30] sm:$0xff]  ;;  %v720_v36 = vld [vmem:[#allocation3 + $0x24] sm:$0xf0]  ;;  %s544_s3 = sshll.u32 %s962_s9, 4  ;;  %vm535_vm1 = vcmask 57344   ;;  %s545_s3 = int_to_ptr.hbm [resolvable:$true] %s544_s3 }
  0x17   :  { %179 = vmatpush.bf16.msra.mxu1 %v610_v12  ;;  %v722_v28 = vld [vmem:[#allocation3 + $0x34] sm:$0xf0]  ;;  %v583_v30 = vld [vmem:[#allocation3 + $0x38] sm:$0xf0]  ;;  %362 = vmatpush.bf16.msra.mxu3 %v746_v26  ;;  %v745_v32 = vld [vmem:[#allocation6 + $0x70] sm:$0xff]  ;;  %v574_v41 = vor.u32 %v720_v36, %v573_v35 }
  0x18   :  { %v582_v33 = vor.u32 %v722_v28, %v581_v24  ;;  %v586_v34 = vor.u32 %v721_v29, %v583_v30  ;;  %v719_v37 = vld [vmem:[#allocation3 + $0x24] sm:$0xf]  ;;  %v575_v38 = vld [vmem:[#allocation3 + $0x28] sm:$0xf0]  ;;  %v565_v43 = vld [vmem:[#allocation3 + $0x10] sm:$0xf] }
  0x19   :  { %v736_v39 = vld [vmem:[#allocation6 + $0x28] sm:$0xff]  ;;  %v578_v42 = vor.u32 %v719_v37, %v575_v38  ;;  %v718_v44 = vld [vmem:[#allocation3 + $0x14] sm:$0xf0]  ;;  %v717_v45 = vld [vmem:[#allocation3 + $0x14] sm:$0xf] }
  0x1a   :  { %167 = vmatpush.bf16.msra.mxu0 %v598_v17  ;;  %350 = vmatpush.bf16.msra.mxu2 %v737_v31  ;;  %v744_v40 = vld [vmem:[#allocation6 + $0x68] sm:$0xff]  ;;  %v567_v46 = vld [vmem:[#allocation3 + $0x18] sm:$0xf0]  ;;  %v735_v47 = vld [vmem:[#allocation6 + $0x20] sm:$0xff]  ;;  %v566_v49 = vor.u32 %v718_v44, %v565_v43 }
  0x1b   :  { %180 = vmatpush.bf16.msra.mxu1 %v602_v18  ;;  %363 = vmatpush.bf16.msra.mxu3 %v745_v32  ;;  %v743_v48 = vld [vmem:[#allocation6 + $0x60] sm:$0xff]  ;;  %v570_v50 = vor.u32 %v717_v45, %v567_v46  ;;  %v716_v52 = vld [vmem:[#allocation3 + $0x4] sm:$0xf0]  ;;  %v559_v54 = vld [vmem:[#allocation3 + $0x8] sm:$0xf0] }
  0x1c   :  { %v557_v51 = vld [vmem:[#allocation3] sm:$0xf]  ;;  %v715_v53 = vld [vmem:[#allocation3 + $0x4] sm:$0xf]  ;;  %v67_v56 = vld [vmem:[%s953_s0] sm:$0xff] }
  0x1d   :  { %v558_v55 = vor.u32 %v716_v52, %v557_v51  ;;  %v562_v57 = vor.u32 %v715_v53, %v559_v54  ;;  %v68_v58 = vpack.c.bf16 %v67_v56, %v67_v56  ;;  %v192_v59 = vld [vmem:[%s955_s2] sm:$0x3]  ;;  %v732_v0 = vld [vmem:[#allocation6 + $0x8] sm:$0xff]  ;;  %v731_v2 = vld [vmem:[#allocation6] sm:$0xff] }
  0x1e   :  { %168 = vmatpush.bf16.msra.mxu0 %v590_v23  ;;  %351 = vmatpush.bf16.msra.mxu2 %v736_v39  ;;  %194 = vst [vmem:[#allocation1] ss:$9 sm:$0xff] %v192_v59  ;;  %v734_v60 = vld [vmem:[#allocation6 + $0x18] sm:$0xff]  ;;  %v733_v62 = vld [vmem:[#allocation6 + $0x10] sm:$0xff]  ;;  %v740_v1 = vld [vmem:[#allocation6 + $0x48] sm:$0xff] }
  0x1f   :  { %181 = vmatpush.bf16.msra.mxu1 %v594_v27  ;;  %364 = vmatpush.bf16.msra.mxu3 %v744_v40  ;;  %v742_v61 = vld [vmem:[#allocation6 + $0x58] sm:$0xff]  ;;  %v741_v63 = vld [vmem:[#allocation6 + $0x50] sm:$0xff]  ;;  %v739_v3 = vld [vmem:[#allocation6 + $0x40] sm:$0xff] }
  0x20   :  { %v754_v4 = vld [vmem:[%s958_s5 + $0x38] sm:$0xff]  ;;  %v753_v5 = vld [vmem:[%s958_s5 + $0x30] sm:$0xff]  ;;  %v752_v8 = vld [vmem:[%s958_s5 + $0x28] sm:$0xff] }
  0x21   :  { %v749_v35 = vld [vmem:[%s958_s5 + $0x10] sm:$0xff]  ;;  %v748_v36 = vld [vmem:[%s958_s5 + $0x8] sm:$0xff]  ;;  %v747_v37 = vld [vmem:[%s958_s5] sm:$0xff] }
  0x22   :  { %169 = vmatpush.bf16.msra.mxu0 %v582_v33  ;;  %352 = vmatpush.bf16.msra.mxu2 %v735_v47  ;;  %v751_v33 = vld [vmem:[%s958_s5 + $0x20] sm:$0xff] }
  0x23   :  { %182 = vmatpush.bf16.msra.mxu1 %v586_v34  ;;  %365 = vmatpush.bf16.msra.mxu3 %v743_v48  ;;  %v750_v34 = vld [vmem:[%s958_s5 + $0x18] sm:$0xff]  ;;  %v376_v38 = vld [vmem:[%s957_s4] sm:$0x1] }
  0x24   :  { %v378_v39 = vpack.i.b16 %v376_v38, %v376_v38 }
  0x25   :  { %v195_v6 = vld [vmem:[#allocation1] sm:$0xff]  ;;  %v196_v7 = vld [vmem:[#allocation1 + $0x9] sm:$0xff] }
  0x26   :  { %170 = vmatpush.bf16.msra.mxu0 %v574_v41  ;;  %353 = vmatpush.bf16.msra.mxu2 %v734_v60  ;;  %v197_v9 = vpack.i.b16 %v195_v6, %v195_v6  ;;  %v200_v10 = vpack.i.b16 %v196_v7, %v196_v7  ;;  %v380_v40 = vperm.slane %v378_v39, 0 }
  0x27   :  { %183 = vmatpush.bf16.msra.mxu1 %v578_v42  ;;  %366 = vmatpush.bf16.msra.mxu3 %v742_v61 }
  0x28   :  { %v199_v11 = vperm.slane %v197_v9, 0  ;;  %v202_v12 = vperm.slane %v200_v10, 0  ;;  %v382_v45 = vunpack.c.l.bf16 %v380_v40  ;;  %v764_v9 = vld [vmem:[#allocation2] ss:$0 sm:$0xff] }
  0x2a   :  { %171 = vmatpush.bf16.msra.mxu0 %v566_v49  ;;  %354 = vmatpush.bf16.msra.mxu2 %v733_v62  ;;  %v205_v16 = vunpack.c.l.bf16 %v199_v11  ;;  %v206_v17 = vunpack.c.l.bf16 %v202_v12 }
  0x2b   :  { %184 = vmatpush.bf16.msra.mxu1 %v570_v50  ;;  %367 = vmatpush.bf16.msra.mxu3 %v741_v63 }
  0x2e   :  { %172 = vmatpush.bf16.msra.mxu0 %v558_v55  ;;  %355 = vmatpush.bf16.msra.mxu2 %v732_v0  ;;  %v469_v55 = vld [vmem:[%s959_s6] sm:$0x1]  ;;  %s851_s6 = smov [#allocation8]  }
  0x2f   :  { %185 = vmatpush.bf16.msra.mxu1 %v562_v57  ;;  %368 = vmatpush.bf16.msra.mxu3 %v740_v1  ;;  %v471_v56 = vpack.i.b16 %v469_v55, %v469_v55  ;;  %s542_s22 = sshll.u32 %s851_s6, 4  ;;  %s543_s22 = int_to_ptr.vmem [resolvable:$true] %s542_s22 }
  0x31   :  { %173 = vmatmul.bf16.vlgmr.msra.gmra.mxu0 %v68_v58  ;;  %v473_v57 = vperm.slane %v471_v56, 0 }
  0x32   :  { %186 = vmatmul.bf16.vlgmr.msra.gmra.mxu1 %v68_v58  ;;  %356 = vmatpush.bf16.msra.mxu2 %v731_v2 }
  0x33   :  { %369 = vmatpush.bf16.msra.mxu3 %v739_v3  ;;  %455 = vmatpush.bf16.msrb.mxu0 %v754_v4  ;;  %v475_v60 = vunpack.c.l.bf16 %v473_v57 }
  0x37   :  { %456 = vmatpush.bf16.msrb.mxu0 %v753_v5  ;;  %v763_v5 = vld [vmem:[%s960_s7] ss:$0 sm:$0xff] }
  0x3b   :  { %457 = vmatpush.bf16.msrb.mxu0 %v752_v8 }
  0x3f   :  { %458 = vmatpush.bf16.msrb.mxu0 %v751_v33 }
  0x43   :  { %459 = vmatpush.bf16.msrb.mxu0 %v750_v34 }
  0x47   :  { %460 = vmatpush.bf16.msrb.mxu0 %v749_v35 }
  0x4b   :  { %461 = vmatpush.bf16.msrb.mxu0 %v748_v36 }
  0x4f   :  { %462 = vmatpush.bf16.msrb.mxu0 %v747_v37 }
  0xae   :  { %v174_v13 = vpop.f32.mrf.mxu0 }
  0xaf   :  { %v187_v14 = vpop.f32.mrf.mxu1 }
  0xb0   :  { %v191_v15 = vpack.c.bf16 %v187_v14, %v174_v13 }
  0xb2   :  { %v203_v18 = vunpack.c.l.bf16 %v191_v15  ;;  %v204_v19 = vunpack.c.h.bf16 %v191_v15 }
  0xb4   :  { %v207_v20 = vadd.f32 %v205_v16, %v203_v18  ;;  %v208_v21 = vadd.f32 %v206_v17, %v204_v19 }
  0xb6   :  { %v176_v22 = vpop.f32.mrf.mxu0  ;;  %v209_v23 = vpack.c.bf16 %v208_v21, %v207_v20 }
  0xb7   :  { %v189_v24 = vpop.f32.mrf.mxu1 }
  0xb8   :  { %v210_v25 = vunpack.c.l.bf16 %v209_v23  ;;  %v211_v26 = vunpack.c.h.bf16 %v209_v23 }
  0xba   :  { %v212_v27 = vmul.f32 0.20019531, %v210_v25  ;;  %v213_v28 = vmul.f32 0.20019531, %v211_v26 }
  0xbc   :  { %v217_v29 = vmax.f32 %v210_v25, %v212_v27  ;;  %v218_v30 = vmax.f32 %v211_v26, %v213_v28 }
  0xbe   :  { %v219_v31 = vpack.c.bf16 %v217_v29, %v217_v29  ;;  %v220_v32 = vpack.c.bf16 %v218_v30, %v218_v30 }
  0xc0   :  { %357 = vmatmul.bf16.vlgmr.msra.gmra.mxu2 %v219_v31  ;;  %370 = vmatmul.bf16.vlgmr.msra.gmra.mxu3 %v220_v32 }
 0x143   :  { %v358_v41 = vpop.f32.mrf.mxu2  ;;  %v371_v42 = vpop.f32.mrf.mxu3 }
 0x144   :  { %v372_v43 = vadd.f32 %v371_v42, %v358_v41 }
 0x146   :  { %v375_v44 = vpack.c.bf16 %v372_v43, %v372_v43 }
 0x148   :  { %v381_v46 = vunpack.c.l.bf16 %v375_v44 }
 0x14a   :  { %v383_v47 = vadd.f32 %v382_v45, %v381_v46 }
 0x14b   :  { %v360_v48 = vpop.f32.mrf.mxu2  ;;  %v373_v49 = vpop.f32.mrf.mxu3 }
 0x14c   :  { %v384_v50 = vpack.c.bf16 %v383_v47, %v383_v47 }
 0x14e   :  { %v385_v51 = vunpack.c.l.bf16 %v384_v50 }
 0x150   :  { %v386_v52 = vmul.f32 0.20019531, %v385_v51 }
 0x152   :  { %v389_v53 = vmax.f32 %v385_v51, %v386_v52 }
 0x154   :  { %v390_v54 = vpack.c.bf16 %v389_v53, %v389_v53 }
 0x156   :  { %463 = vmatmul.bf16.vlgmr.msrb.gmra.mxu0 %v390_v54 }
 0x1d3   :  { %v464_v58 = vpop.f32.mrf.mxu0 }
 0x1d4   :  { %v468_v59 = vpack.c.bf16 %v464_v58, %v464_v58 }
 0x1d6   :  { %v474_v61 = vunpack.c.l.bf16 %v468_v59 }
 0x1d8   :  { %v476_v62 = vadd.f32 %v475_v60, %v474_v61 }
 0x1da   :  { %v477_v63 = vpack.c.bf16 %v476_v62, %v476_v62 }
 0x1db   :  { %v466_v0 = vpop.f32.mrf.mxu0 }
 0x1dc   :  { %v478_v1 = vunpack.c.l.bf16 %v477_v63 }
 0x1de   :  { %v479_v2 = vmul.f32 0.20019531, %v478_v1 }
 0x1e0   :  { %v482_v3 = vmax.f32 %v478_v1, %v479_v2 }
 0x1e2   :  { %v483_v4 = vpack.c.bf16 %v482_v3, %v482_v3 }
 0x1e4   :  { %v484_v6 = vunpack.c.l.bf16 %v483_v4 }
 0x1e6   :  { %v489_v7 = vmul.f32 %v763_v5, %v484_v6 }
 0x1e8   :  { %v491_v8 = vsel %vm490_vm0, %v489_v7, 0.0 }
 0x1e9   :  { %492 = vadd.xlane.f32.xlu0 %v491_v8 }
 0x25c   :  { %v493_v10 = vpop.xlane.xlu0 %492 }
 0x25d   :  { %v498_v11 = vadd.f32 %v764_v9, %v493_v10 }
 0x25f   :  { %499 = vxpose.xlu0.b32.start.end [1/1] (short) (narrow) %v498_v11, 8 }
 0x303   :  { %v515_v12 = vpop.trf.xlu0 }
 0x304   :  { %v531_v13 = vmul.f32 0.5, %v515_v12 }
 0x306   :  { %765 = vtanh.f32 %v531_v13 }
 0x30c   :  { %v766_v14 = vpop.eup %765 }
 0x30d   :  { %v533_v15 = vadd.f32 1.0, %v766_v14 }
 0x30f   :  { %v534_v16 = vmul.f32 0.5, %v533_v15 }
 0x311   :  { %536 = vst.msk [vmem:[#allocation8] sm:$0x1] %vm535_vm1, %v534_v16 }
 0x312   :  { %547 = dma.vmem_to_hbm [thread:$0]  %s543_s22, 16, %s545_s3, [#allocation5]  }
 0x313   :  { %843 = dma.done.wait [#allocation5], 16  }
 0x314   :  { %844 = vsyncadd [#allocation5], 4294967280 }
 0x315   :  { %552 = vsyncpa [#allocation4], 1 }
 0x316   :  { %553 = vsyncpa [#allocation7], 1 }
 0x317   :  { %554 = vsyncpa [#allocation5], 1 }

</bundles_post_ra>
